<compile_context>
chip_gen: v7x
topology: tpu7x:2x2x1
jax: 0.10.0
libtpu: 0.0.40
codegen_flags: <defaults>
</compile_context>

<pallas_src>
import functools

import jax
import jax.numpy as jnp
from jax.experimental import pallas as pl
from jax.experimental.pallas import tpu as pltpu


def _cdiv(a, b):
    return -(-a // b)


def _round_up(x, m):
    return _cdiv(x, m) * m


def _conv_relu_kernel(w_ref, b_ref, xm_ref, xh_ref, o_ref, *,
                      kh, kw, th, halo, w_pad):
    """One row tile: o[r, c] = relu(b + sum_ij w[i,j] * x[r+i, c+j]).

    xm_ref: (TH, W_pad)    rows [tile*TH, tile*TH + TH) of the image.
    xh_ref: (HALO, W_pad)  rows immediately below the tile (halo).
    o_ref : (TH, W_pad)    output block (writeback clips rows>=HO, lanes>=WO).
    """
    f32 = jnp.float32
    bias = b_ref[0]

    def taps_of(win):
        # Column taps hoisted: (KW-1) lane rolls (XLU slot, effectively free).
        # roll(x, W_pad - j)[:, c] == x[:, (c + j) % W_pad]; valid output lanes
        # (c < WO <= W - KW + 1) never read wrapped or padded-garbage lanes.
        win = win.astype(f32)
        cols = [win]
        for j in range(1, kw):
            cols.append(pltpu.roll(win, shift=w_pad - j, axis=1))
        return cols

    def row_partial(cols, i):
        part = cols[0] * w_ref[i, 0]
        for j in range(1, kw):
            part = part + cols[j] * w_ref[i, j]
        return part

    xm = xm_ref[...]

    # ---- interior rows [0, TH - HALO): need no halo data -------------------
    if th > halo:
        cols = taps_of(xm)
        acc = jnp.full((th, w_pad), bias, dtype=f32)        # bias folded in
        for i in range(kh):
            part = row_partial(cols, i)
            if i:
                # Sublane rotation: row r picks up part[(r + i) % TH].  Rows
                # that wrap lie in the last HALO rows, rewritten below.
                part = pltpu.roll(part, shift=th - i, axis=0)
            acc = acc + part
        o_ref[pl.ds(0, th - halo), :] = jnp.maximum(acc[: th - halo, :], 0.0)

    # ---- boundary rows [TH - HALO, TH): need up to KH-1 halo rows ----------
    # Tiny (2*HALO, W_pad) window; this is the only concat and it is
    # HALO-sized, not TH-sized.
    small = jnp.concatenate([xm[th - halo:, :], xh_ref[...]], axis=0)
    scols = taps_of(small)
    bacc = jnp.full((halo, w_pad), bias, dtype=f32)
    for i in range(kh):
        bacc = bacc + row_partial(scols, i)[i:i + halo, :]
    o_ref[pl.ds(th - halo, halo), :] = jnp.maximum(bacc, 0.0)


def _vmem_budget():
    # (per-tile block budget, vmem_limit_bytes).  v7x: 64 MiB physical VMEM;
    # v5e/v6e: 128 MiB, so bigger tiles amortize per-grid-step overhead.
    try:
        kind = jax.devices()[0].device_kind.lower()
    except Exception:  # pragma: no cover
        kind = ""
    if "v5" in kind or "v6" in kind:
        return 16 * 1024 * 1024, 64 * 1024 * 1024
    return 8 * 1024 * 1024, 32 * 1024 * 1024


def _choose_tile_rows(ho, w_pad, kw, halo, budget):
    # Live f32 VMEM per output row: double-buffered in/out blocks (2+2), the
    # KW lane-rolled window copies, and acc/part temporaries (~2).
    per_row = 4 * w_pad * (kw + 6)
    th = max((budget // per_row) // halo * halo, halo)
    th = min(th, max((1024 // halo) * halo, halo))       # bound per-step latency
    th = min(th, _round_up(ho, halo))                    # no more rows than needed
    # Keep >= 2 row tiles when possible so the "parallel" axis feeds both
    # TensorCores on v7x (harmless on single-TC v5e/v6e).
    th = min(th, max(_round_up(_cdiv(ho, 2), halo), halo))
    return max(th, halo)


def single_filter_conv(x, w, b, *, input_dtype=None):
    """x: (H, W) image; w: (KH, KW) filter; b: (1,) bias.

    Returns (1, 1, H-KH+1, W-KW+1) float32, matching singleFilterConv.forward.
    input_dtype=jnp.bfloat16 loads the image in bf16 (f32 accumulate) to halve
    input HBM bytes on the most HBM-bound chips (v5e/v6e).
    """
    w = jnp.asarray(w, dtype=jnp.float32)
    b = jnp.asarray(b, dtype=jnp.float32)
    x = jnp.asarray(x).astype(jnp.float32 if input_dtype is None else input_dtype)

    H, W = x.shape
    KH, KW = w.shape
    HO, WO = H - KH + 1, W - KW + 1
    assert HO >= 1 and WO >= 1, "filter larger than image"

    W_pad = _round_up(W, 128)                       # lane-dense block width
    HALO = _round_up(max(KH - 1, 1), 8)             # 8-row-aligned halo
    budget, vmem_limit = _vmem_budget()
    TH = _choose_tile_rows(HO, W_pad, KW, HALO, budget)   # TH % HALO == 0
    NT = _cdiv(HO, TH)
    halo_step = TH // HALO                          # exact by construction
    hb_max = _cdiv(H, HALO) - 1                     # last in-bounds halo block

    kernel = functools.partial(_conv_relu_kernel, kh=KH, kw=KW, th=TH,
                               halo=HALO, w_pad=W_pad)

    out = pl.pallas_call(
        kernel,
        out_shape=jax.ShapeDtypeStruct((HO, WO), jnp.float32),
        grid=(NT,),
        in_specs=[
            pl.BlockSpec(memory_space=pltpu.MemorySpace.SMEM),   # filter (KH,KW)
            pl.BlockSpec(memory_space=pltpu.MemorySpace.SMEM),   # bias (1,)
            pl.BlockSpec((TH, W_pad), lambda i: (i, 0)),         # tile rows
            # Halo rows: clamped so the DMA start is always in bounds; when the
            # clamp triggers those rows only feed outputs >= HO (clipped).
            pl.BlockSpec((HALO, W_pad),
                         lambda i: (jnp.minimum((i + 1) * halo_step, hb_max), 0)),
        ],
        out_specs=pl.BlockSpec((TH, W_pad), lambda i: (i, 0)),
        compiler_params=pltpu.CompilerParams(
            dimension_semantics=("parallel",),
            vmem_limit_bytes=vmem_limit,
        ),
        cost_estimate=pl.CostEstimate(
            flops=2 * KH * KW * HO * WO,
            transcendentals=0,
            bytes_accessed=(NT * (TH + HALO) * W_pad * x.dtype.itemsize
                            + HO * WO * 4 + (KH * KW + 1) * 4),
        ),
    )(w, b, x, x)

    # Re-add the two unsqueezed NCHW dims from the PyTorch module.
    return out[None, None, :, :]


def _reference(x, w, b):
    # Plain-JAX reference: valid cross-correlation + bias + relu.
    x = jnp.asarray(x, jnp.float32)
    H, W = x.shape
    KH, KW = w.shape
    HO, WO = H - KH + 1, W - KW + 1
    acc = jnp.zeros((HO, WO), jnp.float32) + b[0]
    for i in range(KH):
        for j in range(KW):
            acc = acc + w[i, j] * x[i:i + HO, j:j + WO]
    return jnp.maximum(acc, 0.0)[None, None, :, :]


if __name__ == "__main__":
    key = jax.random.PRNGKey(0)
    kx, kw_, kb = jax.random.split(key, 3)

    # 16x16 image, 3x3 hand-engineered filter (shapes consistent with module).
    x = jax.random.normal(kx, (16, 16), dtype=jnp.float32)
    w = jax.random.normal(kw_, (3, 3), dtype=jnp.float32)
    b = jax.random.normal(kb, (1,), dtype=jnp.float32)

    out = jax.block_until_ready(single_filter_conv(x, w, b))
    ref = _reference(x, w, b)
    assert out.shape == (1, 1, 14, 14), out.shape
    assert jnp.allclose(out, ref, atol=1e-4, rtol=1e-4), "mismatch vs reference"

    # Odd sizes: partial row/lane blocks, multi-tile grid with a real halo.
    k2 = jax.random.PRNGKey(1)
    kx2, kw2, kb2 = jax.random.split(k2, 3)
    x2 = jax.random.normal(kx2, (33, 21), dtype=jnp.float32)
    w2 = jax.random.normal(kw2, (5, 4), dtype=jnp.float32)
    b2 = jax.random.normal(kb2, (1,), dtype=jnp.float32)

    out2 = jax.block_until_ready(single_filter_conv(x2, w2, b2))
    ref2 = _reference(x2, w2, b2)
    assert out2.shape == (1, 1, 29, 18), out2.shape
    assert jnp.allclose(out2, ref2, atol=1e-4, rtol=1e-4), "mismatch vs reference (odd)"

    # Optional bf16 input-load path (f32 accumulate); compare against the
    # identically-quantized reference so the tolerance stays tight.
    out_bf = jax.block_until_ready(
        single_filter_conv(x2, w2, b2, input_dtype=jnp.bfloat16))
    ref_bf = _reference(x2.astype(jnp.bfloat16).astype(jnp.float32), w2, b2)
    assert jnp.allclose(out_bf, ref_bf, atol=1e-3, rtol=1e-3), "mismatch vs reference (bf16)"

    print("KERNEL_OK")
</pallas_src>

<mosaic_0001>
module attributes {stable_mosaic.version = 11 : i64} {
  func.func @_conv_relu_kernel(%arg0: i32, %arg1: memref<3x3xf32, #tpu.memory_space<smem>>, %arg2: memref<1xf32, #tpu.memory_space<smem>>, %arg3: memref<8x128xf32, #tpu.memory_space<vmem>>, %arg4: memref<8x128xf32, #tpu.memory_space<vmem>>, %arg5: memref<8x128xf32, #tpu.memory_space<vmem>>) attributes {dimension_semantics = [#tpu.dimension_semantics<parallel>], iteration_bounds = array<i64: 2>, scalar_prefetch = 0 : i64, scratch_operands = 0 : i64, tpu.core_type = #tpu.core_type<tc>, window_params = [{transform_indices = @transform_0, window_bounds = array<i64: 3, 3>}, {transform_indices = @transform_1, window_bounds = array<i64: 1>}, {transform_indices = @transform_2, window_bounds = array<i64: 8, 128>}, {transform_indices = @transform_3, window_bounds = array<i64: 8, 128>}, {transform_indices = @transform_4, window_bounds = array<i64: 8, 128>}]} {
    %c0 = arith.constant 0 : index
    %0 = memref.load %arg2[%c0] : memref<1xf32, #tpu.memory_space<smem>>
    %c0_0 = arith.constant 0 : index
    %c0_1 = arith.constant 0 : index
    %1 = vector.load %arg3[%c0_0, %c0_1] : memref<8x128xf32, #tpu.memory_space<vmem>>, vector<8x128xf32>
    %c0_2 = arith.constant 0 : index
    %c0_3 = arith.constant 0 : index
    %2 = vector.load %arg4[%c0_2, %c0_3] : memref<8x128xf32, #tpu.memory_space<vmem>>, vector<8x128xf32>
    %3 = tpu.concatenate %1, %2 in 0 : vector<8x128xf32>, vector<8x128xf32> -> vector<16x128xf32>
    %c127_i32 = arith.constant 127 : i32
    %4 = tpu.dynamic_rotate %3 by %c127_i32 dim 1 : vector<16x128xf32>, i32 -> vector<16x128xf32>
    %c126_i32 = arith.constant 126 : i32
    %5 = tpu.dynamic_rotate %3 by %c126_i32 dim 1 : vector<16x128xf32>, i32 -> vector<16x128xf32>
    %6 = vector.broadcast %0 : f32 to vector<8x128xf32>
    %c0_4 = arith.constant 0 : index
    %c0_5 = arith.constant 0 : index
    %7 = memref.load %arg1[%c0_4, %c0_5] : memref<3x3xf32, #tpu.memory_space<smem>>
    %8 = vector.broadcast %7 : f32 to vector<16x128xf32>
    %9 = arith.mulf %3, %8 : vector<16x128xf32>
    %c0_6 = arith.constant 0 : index
    %c1 = arith.constant 1 : index
    %10 = memref.load %arg1[%c0_6, %c1] : memref<3x3xf32, #tpu.memory_space<smem>>
    %11 = vector.broadcast %10 : f32 to vector<16x128xf32>
    %12 = arith.mulf %4, %11 : vector<16x128xf32>
    %13 = arith.addf %9, %12 : vector<16x128xf32>
    %c0_7 = arith.constant 0 : index
    %c2 = arith.constant 2 : index
    %14 = memref.load %arg1[%c0_7, %c2] : memref<3x3xf32, #tpu.memory_space<smem>>
    %15 = vector.broadcast %14 : f32 to vector<16x128xf32>
    %16 = arith.mulf %5, %15 : vector<16x128xf32>
    %17 = arith.addf %13, %16 : vector<16x128xf32>
    %18 = vector.extract_strided_slice %17 {offsets = [0, 0], sizes = [8, 128], strides = [1, 1]} : vector<16x128xf32> to vector<8x128xf32>
    %19 = arith.addf %6, %18 : vector<8x128xf32>
    %c1_8 = arith.constant 1 : index
    %c0_9 = arith.constant 0 : index
    %20 = memref.load %arg1[%c1_8, %c0_9] : memref<3x3xf32, #tpu.memory_space<smem>>
    %21 = vector.broadcast %20 : f32 to vector<16x128xf32>
    %22 = arith.mulf %3, %21 : vector<16x128xf32>
    %c1_10 = arith.constant 1 : index
    %c1_11 = arith.constant 1 : index
    %23 = memref.load %arg1[%c1_10, %c1_11] : memref<3x3xf32, #tpu.memory_space<smem>>
    %24 = vector.broadcast %23 : f32 to vector<16x128xf32>
    %25 = arith.mulf %4, %24 : vector<16x128xf32>
    %26 = arith.addf %22, %25 : vector<16x128xf32>
    %c1_12 = arith.constant 1 : index
    %c2_13 = arith.constant 2 : index
    %27 = memref.load %arg1[%c1_12, %c2_13] : memref<3x3xf32, #tpu.memory_space<smem>>
    %28 = vector.broadcast %27 : f32 to vector<16x128xf32>
    %29 = arith.mulf %5, %28 : vector<16x128xf32>
    %30 = arith.addf %26, %29 : vector<16x128xf32>
    %31 = vector.extract_strided_slice %30 {offsets = [1, 0], sizes = [8, 128], strides = [1, 1]} : vector<16x128xf32> to vector<8x128xf32>
    %32 = arith.addf %19, %31 : vector<8x128xf32>
    %c2_14 = arith.constant 2 : index
    %c0_15 = arith.constant 0 : index
    %33 = memref.load %arg1[%c2_14, %c0_15] : memref<3x3xf32, #tpu.memory_space<smem>>
    %34 = vector.broadcast %33 : f32 to vector<16x128xf32>
    %35 = arith.mulf %3, %34 : vector<16x128xf32>
    %c2_16 = arith.constant 2 : index
    %c1_17 = arith.constant 1 : index
    %36 = memref.load %arg1[%c2_16, %c1_17] : memref<3x3xf32, #tpu.memory_space<smem>>
    %37 = vector.broadcast %36 : f32 to vector<16x128xf32>
    %38 = arith.mulf %4, %37 : vector<16x128xf32>
    %39 = arith.addf %35, %38 : vector<16x128xf32>
    %c2_18 = arith.constant 2 : index
    %c2_19 = arith.constant 2 : index
    %40 = memref.load %arg1[%c2_18, %c2_19] : memref<3x3xf32, #tpu.memory_space<smem>>
    %41 = vector.broadcast %40 : f32 to vector<16x128xf32>
    %42 = arith.mulf %5, %41 : vector<16x128xf32>
    %43 = arith.addf %39, %42 : vector<16x128xf32>
    %44 = vector.extract_strided_slice %43 {offsets = [2, 0], sizes = [8, 128], strides = [1, 1]} : vector<16x128xf32> to vector<8x128xf32>
    %45 = arith.addf %32, %44 : vector<8x128xf32>
    %cst = arith.constant 0.000000e+00 : f32
    %46 = vector.broadcast %cst : f32 to vector<8x128xf32>
    %47 = arith.maximumf %45, %46 : vector<8x128xf32>
    %c0_20 = arith.constant 0 : index
    %c0_21 = arith.constant 0 : index
    %48 = vector.load %arg5[%c0_20, %c0_21] : memref<8x128xf32, #tpu.memory_space<vmem>>, vector<8x128xf32>
    tpu.vector_store %arg5[%c0_20, %c0_21], %47 {strides = array<i32>} : memref<8x128xf32, #tpu.memory_space<vmem>>, vector<8x128xf32>,
    return
  }
  func.func @transform_0(%arg0: i32) -> (i32, i32) {
    %c0_i32 = arith.constant 0 : i32
    %c0_i32_0 = arith.constant 0 : i32
    %c0_i32_1 = arith.constant 0 : i32
    return %c0_i32, %c0_i32_0 : i32, i32
  }
  func.func @transform_1(%arg0: i32) -> i32 {
    %c0_i32 = arith.constant 0 : i32
    %c0_i32_0 = arith.constant 0 : i32
    return %c0_i32 : i32
  }
  func.func @transform_2(%arg0: i32) -> (i32, i32) {
    %c0_i32 = arith.constant 0 : i32
    %c0_i32_0 = arith.constant 0 : i32
    return %arg0, %c0_i32 : i32, i32
  }
  func.func @transform_3(%arg0: i32) -> (i32, i32) {
    %c1_i32 = arith.constant 1 : i32
    %0 = arith.addi %arg0, %c1_i32 : i32
    %c1_i32_0 = arith.constant 1 : i32
    %1 = arith.muli %0, %c1_i32_0 : i32
    %c1_i32_1 = arith.constant 1 : i32
    %2 = arith.minsi %1, %c1_i32_1 : i32
    %c0_i32 = arith.constant 0 : i32
    %c0_i32_2 = arith.constant 0 : i32
    return %2, %c0_i32 : i32, i32
  }
  func.func @transform_4(%arg0: i32) -> (i32, i32) {
    %c0_i32 = arith.constant 0 : i32
    %c0_i32_0 = arith.constant 0 : i32
    return %arg0, %c0_i32 : i32, i32
  }
}

</mosaic_0001>

<bundles_post_ra>
// kernel: tpu_custom_call.1
= control target key start
LH: loop header
LB: loop body
LE: loop exit
PB: predicated region body
PF: predicated region fallthrough
CT: control target
= control target key end

     0   :  { %s1092_s0 = inlined_call_operand.hbm [shape: f32[3,3], index: 0, kind: input, shape index: {}]   ;;  %s1093_s1 = inlined_call_operand.<no memory space> [shape: f32[1], index: 1, kind: input, shape index: {}]   ;;  %s1094_s2 = inlined_call_operand.hbm [shape: f32[16,16], index: 2, kind: input, shape index: {}]   ;;  %s1095_s3 = inlined_call_operand.hbm [shape: f32[16,16], index: 3, kind: input, shape index: {}]   ;;  %s1096_s4 = inlined_call_operand.hbm [shape: f32[14,14], index: 4, kind: output, shape index: {}]  }
   0x1   :  { %9 = sst [smem:[#allocation2]] %s1093_s1 }
   0x2   :  { %10 = vsyncpa [#allocation6], 0 }
   0x3   :  { %11 = vsyncpa [#allocation4], 0 }
   0x4   :  { %13 = vsyncpa [#allocation4 + $0x1], 0 }
   0x5   :  { %14 = vsyncpa [#allocation9], 0 }
   0x6   :  { %16 = vsyncpa [#allocation9 + $0x1], 0 }
   0x7   :  { %17 = vsyncpa [#allocation5], 0 }
   0x8   :  { %19 = vsyncpa [#allocation5 + $0x1], 0  ;;  %s788_s17 = smov 0   ;;  %s790_s18 = smov 0  }
   0x9   :  { %s792_s19 = smov 0   ;;  %s794_s20 = smov 0  }
   0xa   :  { %s796_s21 = smov 0   ;;  %s798_s22 = smov 0  }
   0xb   :  { %s800_s1 = smov 0  }
   0xc LB: > { %s822_s23 = sadd.s32 4294967295, %s752_s1   ;;  %s468_s24 = sadd.s32 4294967294, %s752_s1   ;;  %s752_s1 = sphi %s800_s1, %s1128_s1   ;;  %s748_s22 = sphi %s798_s22, %s1127_s22   ;;  %s744_s21 = sphi %s796_s21, %s1126_s21   ;;  %s740_s20 = sphi %s794_s20, %s1125_s20   ;;  %s736_s19 = sphi %s792_s19, %s1124_s19   ;;  %s732_s18 = sphi %s790_s18, %s1123_s18   ;;  %s728_s17 = sphi %s788_s17, %s1122_s17  }
   0xd   : > { %p87_p0 = scmp.ne.s32.totalorder %s744_s21, %s740_s20  ;;  %p1097_p1 = scmp.eq.s32.totalorder %s822_s23, 0 }
   0xe   : > { %p119_p2 = scmp.ne.s32.totalorder %s732_s18, %s728_s17  ;;  %p149_p5 = scmp.eq.s32.totalorder %s468_s24, 1 }
   0xf   : > { %p832_p4 = por %p1097_p1, %p87_p0  ;;  %p469_p7 = scmp.ge.s32.totalorder %s752_s1, 1 }
  0x10   : > { %p838_p6 = por %p119_p2, %p1097_p1  ;;  %p843_p8 = por %p149_p5, %p87_p0 }
  0x11   : > { %s1103_s25 = scalar_select %p832_p4, 1, 0 }
  0x12   : > { %s1104_s26 = scalar_select %p838_p6, 1, 0 }
  0x13   : > { %s1105_s27 = scalar_select %p843_p8, 1, 0 }
  0x14   : > { %p156_p9 = scmp.lt.s32.totalorder %s752_s1, 3  ;;  %p1098_p12 = scmp.eq.s32.totalorder %s752_s1, 0 }
  0x15   : > { %s74_s29 = sadd.s32 1, %s748_s22  ;;  %p81_p2 = scmp.ne.s32.totalorder %s748_s22, %s744_s21 }
  0x16   : > { %p848_p10 = pnand %p469_p7, %p156_p9  ;;  %p1099_p0 = scmp.lt.s32.totalorder %s752_s1, 2 }
  0x17   : > { %p868_p5 = por %p1098_p12, %p81_p2  ;;  %p1109_p7 = scmp.eq.s32.totalorder %s822_s23, 1 }
  0x18   : > { %p503_p13 = pneg %p848_p10  ;;  %s181_s7 = sand.u32 1, %s748_s22  }
  0x19   : > { %p874_p9 = por %p1109_p7, %p81_p2  ;;  %s581_s10 = scalar_lea.hbm %s1092_s0, 64 }
  0x1a   : > { %p861_p3 = pnand %p503_p13, %p1097_p1  ;;  %p582_p13 = scmp.ne.s32.totalorder %s1092_s0, %s581_s10 }
  0x1b   : > { %s1110_s6 = scalar_select %p874_p9, 1, 0 }
  0x1c   : > { %p583_p11 = pneg %p861_p3  ;;  %p588_p2 = scmp.lt.u32.totalorder %s581_s10, %s1092_s0 }
  0x1e   : > { %p584_p1 = pnand %p583_p11, %p582_p13 }
  0x20   : > { %p585_p12 = pneg %p584_p1 }
  0x22   : > { %p590_p7 = pnand %p588_p2, %p585_p12 }
  0x24   : > { %593 = shalt.err (!%p590_p7)
}
  0x25   : > { %s754_s15 = smov [#allocation3]   ;;  %s472_s24 = sshll.u32 %s181_s7, 3 }
  0x26   : > { %506 = dma.hbm_to_smem (!%p861_p3), %s1092_s0, 64, %s754_s15, [#allocation6]  }
  0x27   : > { %s473_s8 = sshll.u32 %s752_s1, 7  ;;  %s185_s30 = scalar_lea.vmem [#allocation7], %s472_s24 }
  0x28   : > { %s899_s12 = scalar_lea.hbm %s1094_s2, %s473_s8  ;;  %s192_s10 = sshll.u32 %s185_s30, 4  ;;  %s901_s10 = int_to_ptr.vmem [resolvable:$true] %s192_s10 }
  0x29   : > { %p907_p1 = pnand %p1099_p0, %p868_p5  ;;  %s912_s14 = sadd.s32 1, %s752_s1  }
  0x2a   : > { %s182_s15 = scalar_lea.sflag [#allocation4], %s181_s7  ;;  %s594_s16 = scalar_lea.hbm %s899_s12, 128 }
  0x2b   : > { %p595_p3 = scmp.ne.s32.totalorder %s899_s12, %s594_s16  ;;  %p596_p11 = pneg %p907_p1 }
  0x2c   : > { %s599_s24 = scalar_lea.hbm %s1094_s2, 256  ;;  %p600_p5 = scmp.lt.u32.totalorder %s899_s12, %s1094_s2 }
  0x2d   : > { %p597_p12 = pnand %p596_p11, %p595_p3  ;;  %p601_p2 = scmp.lt.u32.totalorder %s599_s24, %s594_s16 }
  0x2e   : > { %p603_p0 = scmp.lt.u32.totalorder %s594_s16, %s899_s12 }
  0x2f   : > { %p598_p13 = pneg %p597_p12  ;;  %p602_p7 = por %p601_p2, %p600_p5 }
  0x31   : > { %p604_p8 = por %p603_p0, %p602_p7 }
  0x33   : > { %p605_p9 = pnand %p604_p8, %p598_p13 }
  0x35   : > { %608 = shalt.err (!%p605_p9)
}
  0x36   : > { %s609_s7 = scalar_lea.vmem %s901_s10, 128  ;;  %s755_s11 = smov [#allocation7]  }
  0x37   : > { %p610_p3 = scmp.ne.s32.totalorder %s901_s10, %s609_s7  ;;  %s614_s30 = sshll.u32 %s755_s11, 4  ;;  %s615_s30 = int_to_ptr.vmem [resolvable:$false] %s614_s30 }
  0x38   : > { %s616_s17 = scalar_lea.vmem %s615_s30, 256  ;;  %p617_p4 = scmp.lt.s32.totalorder %s901_s10, %s615_s30 }
  0x39   : > { %p612_p12 = pnand %p610_p3, %p596_p11  ;;  %p618_p5 = scmp.lt.s32.totalorder %s616_s17, %s609_s7 }
  0x3b   : > { %p613_p6 = pneg %p612_p12  ;;  %p619_p2 = por %p618_p5, %p617_p4 }
  0x3d   : > { %p620_p0 = pnand %p619_p2, %p613_p6 }
  0x3f   : > { %623 = shalt.err (!%p620_p0)
}
  0x40   : > { %510 = dma.hbm_to_vmem [thread:$0]  (!%p907_p1), %s899_s12, 128, %s901_s10, %s182_s15  }
  0x41   : > { %s71_s16 = ssub.s32 %s752_s1, %s912_s14  ;;  %p98_p4 = scmp.lt.s32.totalorder %s912_s14, 1 }
  0x42   : > { %p72_p6 = scmp.eq.s32.totalorder %s71_s16, 0  ;;  %s100_s13 = sadd.s32 1, %s912_s14 }
  0x43   : > { %s99_s5 = scalar_select %p98_p4, %s912_s14, 1 }
  0x44   : > { %s947_s24 = scalar_select %p72_p6, %s748_s22, %s74_s29  }
  0x45   : > { %p101_p8 = scmp.lt.s32.totalorder %s100_s13, 1  ;;  %p113_p9 = scmp.ne.s32.totalorder %s736_s19, %s732_s18 }
  0x46   : > { %s199_s8 = sand.u32 1, %s736_s19   ;;  %s106_s9 = sadd.s32 1, %s736_s19 }
  0x47   : > { %s1130_s13 = smov (!%p101_p8, %s100_s13), 1  ;;  %p1112_p11 = scmp.eq.s32.totalorder %s752_s1, 0 }
  0x48   : > { %s103_s7 = ssub.s32 %s99_s5, %s1130_s13  ;;  %s474_s11 = sshll.u32 %s199_s8, 3 }
  0x49   : > { %p115_p13 = por %p113_p9, %p1112_p11  ;;  %p104_p1 = scmp.eq.s32.totalorder %s103_s7, 0 }
  0x4a   : > { %s475_s12 = sshll.u32 %s99_s5, 7  ;;  %s203_s10 = scalar_lea.vmem [#allocation8], %s474_s11 }
  0x4b   : > { %s213_s15 = sshll.u32 %s203_s10, 4  ;;  %s961_s29 = scalar_lea.hbm %s1095_s3, %s475_s12  ;;  %s963_s15 = int_to_ptr.vmem [resolvable:$true] %s213_s15 }
  0x4c   : > { %s956_s30 = scalar_select %p104_p1, %s736_s19, %s106_s9  }
  0x4d   : > { %p1113_p7 = scmp.lt.s32.totalorder %s752_s1, 2  ;;  %s200_s5 = scalar_lea.sflag [#allocation9], %s199_s8 }
  0x4e   : > { %s624_s9 = scalar_lea.hbm %s961_s29, 128  ;;  %s629_s12 = scalar_lea.hbm %s1095_s3, 256 }
  0x4f   : > { %p967_p3 = pnand %p1113_p7, %p115_p13  ;;  %p625_p12 = scmp.ne.s32.totalorder %s961_s29, %s624_s9 }
  0x50   : > { %p630_p4 = scmp.lt.u32.totalorder %s961_s29, %s1095_s3  ;;  %p631_p6 = scmp.lt.u32.totalorder %s629_s12, %s624_s9 }
  0x51   : > { %p626_p5 = pneg %p967_p3  ;;  %p633_p9 = scmp.lt.u32.totalorder %s624_s9, %s961_s29 }
  0x52   : > { %p632_p8 = por %p631_p6, %p630_p4 }
  0x53   : > { %p627_p2 = pnand %p626_p5, %p625_p12 }
  0x54   : > { %p634_p11 = por %p633_p9, %p632_p8 }
  0x55   : > { %p628_p0 = pneg %p627_p2 }
  0x57   : > { %p635_p13 = pnand %p634_p11, %p628_p0 }
  0x59   : > { %638 = shalt.err (!%p635_p13)
}
  0x5a   : > { %s639_s8 = scalar_lea.vmem %s963_s15, 128  ;;  %s756_s16 = smov [#allocation8]  }
  0x5b   : > { %p640_p1 = scmp.ne.s32.totalorder %s963_s15, %s639_s8  ;;  %s644_s7 = sshll.u32 %s756_s16, 4  ;;  %s645_s7 = int_to_ptr.vmem [resolvable:$false] %s644_s7 }
  0x5c   : > { %s646_s11 = scalar_lea.vmem %s645_s7, 256  ;;  %p647_p2 = scmp.lt.s32.totalorder %s963_s15, %s645_s7 }
  0x5d   : > { %p642_p7 = pnand %p640_p1, %p626_p5  ;;  %p648_p4 = scmp.lt.s32.totalorder %s646_s11, %s639_s8 }
  0x5f   : > { %p643_p12 = pneg %p642_p7  ;;  %p649_p6 = por %p648_p4, %p647_p2 }
  0x61   : > { %p650_p8 = pnand %p649_p6, %p643_p12 }
  0x63   : > { %653 = shalt.err (!%p650_p8)
}
  0x64   : > { %513 = dma.hbm_to_vmem [thread:$0]  (!%p967_p3), %s961_s29, 128, %s963_s15, %s200_s5  }
  0x65   : > { %222 = sbr.rel (%p848_p10) target bundleno = 268 (0x10c), region = 36  ;;  %p1115_p5 = scmp.eq.s32.totalorder (!%p848_p10), %s822_s23, 0 }
  0x6c   : > { %711 = dma.done.wait (%p1115_p5), [#allocation6], 64   ;;  %p1116_p0 = pmov %p1115_p5 }
  0x6d   : > { %s1003_s9 = sand.u32 1, %s744_s21   ;;  %p1117_p3 = scmp.ne.s32.totalorder %s1103_s25, 0 }
  0x6e   : > { %713 = vsyncadd (%p1116_p0), [#allocation6], 4294967232  ;;  %s478_s13 = sshll.u32 %s1003_s9, 3  ;;  %s229_s12 = scalar_lea.sflag [#allocation4], %s1003_s9 }
  0x6f   : > { %s232_s15 = scalar_lea.vmem [#allocation7], %s478_s13 }
  0x70   : > { %715 = dma.done.wait (%p1117_p3), %s229_s12, 128  }
  0x71   : > { %717 = vsyncadd (%p1117_p3), %s229_s12, 4294967168  ;;  %s237_s28 = sand.u32 1, %s732_s18   ;;  %p1118_p10 = scmp.ne.s32.totalorder %s1104_s26, 0 }
  0x72   : > { %s479_s29 = sshll.u32 %s237_s28, 3  ;;  %s238_s5 = scalar_lea.sflag [#allocation9], %s237_s28 }
  0x73   : > { %s241_s10 = scalar_lea.vmem [#allocation8], %s479_s29 }
  0x74   : > { %719 = dma.done.wait (%p1118_p10), %s238_s5, 128  }
  0x75   : > { %721 = vsyncadd (%p1118_p10), %s238_s5, 4294967168 }
  0x76   : > { %246 = sfence }
  0x77   : > { %v276_v0 = vld [vmem:[%s232_s15] sm:$0xff]  ;;  %s757_s17 = smov 127   ;;  %s758_s8 = smov 126   ;;  %v277_v1 = vld [vmem:[%s241_s10] sm:$0xff]  ;;  %vm317_vm0 = vcmask 1046528   ;;  %vm341_vm1 = vcmask 1045504  }
  0x78   : > { %278 = vrot.lane.b32.xlu0 %v276_v0, %s757_s17  ;;  %282 = vrot.lane.b32.xlu1 %v276_v0, %s758_s8  ;;  %s483_s25 = sld [smem:[#allocation3 + $0x80]]  ;;  %s481_s11 = sld [smem:[#allocation3 + $0x1]] }
  0x79   : > { %s486_s16 = sld [smem:[#allocation3 + $0x100]]  ;;  %s1018_s12 = sld [smem:[#allocation3 + $0x81]] }
  0x7a   : > { %s287_s7 = sld [smem:[#allocation3]]  ;;  %s1020_s28 = sld [smem:[#allocation3 + $0x101]] }
  0x7b   : > { %s1022_s26 = sld [smem:[#allocation3 + $0x82]]  ;;  %s1030_s5 = sld [smem:[#allocation2]] }
  0x7c   : > { %280 = vrot.lane.b32.xlu0 %v277_v1, %s757_s17  ;;  %284 = vrot.lane.b32.xlu1 %v277_v1, %s758_s8  ;;  %s1024_s15 = sld [smem:[#allocation3 + $0x102]]  ;;  %s490_s10 = sshll.u32 %s822_s23, 7 }
  0x7d   : > { %s482_s29 = sld [smem:[#allocation3 + $0x2]]  ;;  %s271_s17 = scalar_lea.vmem [#allocation10], %s478_s13 }
  0x7e   : > { %v300_v2 = vstv %s483_s25  ;;  %v291_v5 = vstv %s481_s11  ;;  %s363_s8 = sshll.u32 %s271_s17, 4  ;;  %s350_s11 = scalar_lea.sflag [#allocation5], %s1003_s9  ;;  %s1041_s8 = int_to_ptr.vmem [resolvable:$true] %s363_s8 }
  0x7f   : > { %v324_v3 = vstv %s486_s16  ;;  %v304_v6 = vstv %s1018_s12  ;;  %v301_v8 = vmul.f32 %v300_v2, %v276_v0  ;;  %v302_v19 = vmul.f32 %v300_v2, %v277_v1  ;;  %s654_s12 = scalar_lea.vmem %s1041_s8, 128  ;;  %p1119_p11 = scmp.ne.s32.totalorder %s1110_s6, 0 }
  0x80   : > { %v288_v4 = vstv %s287_s7  ;;  %v328_v7 = vstv %s1020_s28  ;;  %v325_v9 = vmul.f32 %v324_v3, %v276_v0  ;;  %v326_v20 = vmul.f32 %v324_v3, %v277_v1  ;;  %s1039_s7 = scalar_lea.hbm %s1096_s4, %s490_s10  ;;  %p655_p9 = scmp.ne.s32.totalorder %s1041_s8, %s654_s12 }
  0x81   : > { %v289_v11 = vmul.f32 %v288_v4, %v276_v0  ;;  %v310_v13 = vstv %s1022_s26  ;;  %v286_v38 = vstv %s1030_s5  ;;  %s759_s23 = smov [#allocation10]  }
  0x82   : > { %v334_v14 = vstv %s1024_s15  ;;  %p656_p13 = pnand %p655_p9, %p1119_p11  ;;  %s658_s13 = sshll.u32 %s759_s23, 4  ;;  %s659_s13 = int_to_ptr.vmem [resolvable:$false] %s658_s13 }
  0x83   : > { %v295_v16 = vstv %s482_s29  ;;  %s660_s28 = scalar_lea.vmem %s659_s13, 256  ;;  %p661_p7 = scmp.lt.s32.totalorder %s1041_s8, %s659_s13 }
  0x84   : > { %p657_p1 = pneg %p656_p13  ;;  %p662_p12 = scmp.lt.s32.totalorder %s660_s28, %s654_s12 }
  0x86   : > { %p663_p2 = por %p662_p12, %p661_p7 }
  0x88   : > { %p664_p4 = pnand %p663_p2, %p657_p1 }
  0xea   : > { %v279_v10 = vpop.permute.xlu0 %278  ;;  %v283_v12 = vpop.permute.xlu1 %282 }
  0xeb   : > { %v292_v15 = vmul.f32 %v291_v5, %v279_v10  ;;  %v305_v17 = vmul.f32 %v304_v6, %v279_v10  ;;  %v329_v18 = vmul.f32 %v328_v7, %v279_v10  ;;  %v311_v23 = vmul.f32 %v310_v13, %v283_v12 }
  0xec   : > { %v335_v24 = vmul.f32 %v334_v14, %v283_v12  ;;  %v296_v26 = vmul.f32 %v295_v16, %v283_v12 }
  0xed   : > { %v307_v21 = vadd.f32 %v305_v17, %v301_v8  ;;  %v331_v22 = vadd.f32 %v329_v18, %v325_v9  ;;  %v293_v25 = vadd.f32 %v292_v15, %v289_v11 }
  0xee   : > { %v281_v27 = vpop.permute.xlu0 %280  ;;  %v285_v28 = vpop.permute.xlu1 %284 }
  0xef   : > { %v306_v29 = vmul.f32 %v304_v6, %v281_v27  ;;  %v330_v30 = vmul.f32 %v328_v7, %v281_v27  ;;  %v312_v31 = vmul.f32 %v310_v13, %v285_v28  ;;  %v336_v32 = vmul.f32 %v334_v14, %v285_v28 }
  0xf0   : > { %v313_v35 = vadd.f32 %v311_v23, %v307_v21  ;;  %v337_v36 = vadd.f32 %v335_v24, %v331_v22  ;;  %v297_v37 = vadd.f32 %v296_v26, %v293_v25 }
  0xf1   : > { %v308_v33 = vadd.f32 %v306_v29, %v302_v19  ;;  %v332_v34 = vadd.f32 %v330_v30, %v326_v20 }
  0xf2   : > { %v318_v41 = vrot.slane %v313_v35, 1  ;;  %v342_v43 = vrot.slane %v337_v36, 2  ;;  %v298_v45 = vadd.f32 %v297_v37, %v286_v38 }
  0xf3   : > { %v314_v39 = vadd.f32 %v312_v31, %v308_v33  ;;  %v338_v40 = vadd.f32 %v336_v32, %v332_v34 }
  0xf5   : > { %v319_v42 = vrot.slane %v314_v39, 1  ;;  %v343_v44 = vrot.slane %v338_v40, 2 }
  0xf7   : > { %v320_v46 = vsel %vm317_vm0, %v318_v41, %v319_v42  ;;  %v344_v47 = vsel %vm341_vm1, %v342_v43, %v343_v44 }
  0xf8   : > { %v322_v48 = vadd.f32 %v320_v46, %v298_v45 }
  0xfa   : > { %v346_v49 = vadd.f32 %v344_v47, %v322_v48 }
  0xfc   : > { %v347_v50 = vmax.f32 %v346_v49, 0.0 }
  0xfe   : > { %348 = vst [vmem:[%s271_s17] sm:$0xff] %v347_v50 }
  0xff   : > { %667 = shalt.err (!%p664_p4)
}
 0x100   : > { %s668_s9 = scalar_lea.hbm %s1039_s7, 128  ;;  %s672_s29 = scalar_lea.hbm %s1096_s4, 256 }
 0x101   : > { %p669_p6 = scmp.ne.s32.totalorder %s1039_s7, %s668_s9  ;;  %p673_p0 = scmp.lt.u32.totalorder %s1039_s7, %s1096_s4 }
 0x102   : > { %p674_p3 = scmp.lt.u32.totalorder %s672_s29, %s668_s9  ;;  %p676_p9 = scmp.lt.u32.totalorder %s668_s9, %s1039_s7 }
 0x103   : > { %p670_p8 = pnand %p669_p6, %p1119_p11 }
 0x104   : > { %p675_p10 = por %p674_p3, %p673_p0 }
 0x105   : > { %p671_p5 = pneg %p670_p8 }
 0x106   : > { %p677_p13 = por %p676_p9, %p675_p10 }
 0x108   : > { %p678_p1 = pnand %p677_p13, %p671_p5 }
 0x10a   : > { %681 = shalt.err (!%p678_p1)
}
 0x10b   : > { %501 = dma.vmem_to_hbm [thread:$0]  (%p1119_p11), %s1041_s8, 128, %s1039_s7, %s350_s11  }
 0x10c PF: > { %s375_s17 = sand.u32 1, %s740_s20   ;;  %p1120_p7 = scmp.ne.s32.totalorder %s1105_s27, 0 }
 0x10d   : > { %p1121_p12 = scmp.ge.s32.totalorder %s752_s1, 2  ;;  %s376_s25 = scalar_lea.sflag [#allocation5], %s375_s17 }
 0x10f   : > { %p515_p2 = pnand %p1121_p12, %p1120_p7 }
 0x111   : > { %723 = dma.done.wait (!%p515_p2), %s376_s25, 128  }
 0x112   : > { %725 = vsyncadd (!%p515_p2), %s376_s25, 4294967168  ;;  %p22_p11 = scmp.ge.s32.totalorder %s912_s14, 4   ;;  %s1122_s17 = smov %s732_s18 }
 0x113   : > { %s1123_s18 = smov %s736_s19  ;;  %s1124_s19 = smov %s956_s30 }
 0x114   : > { %s1125_s20 = smov %s744_s21  ;;  %s1126_s21 = smov %s748_s22 }
 0x115   : > { %s1127_s22 = smov %s947_s24  ;;  %s1128_s1 = smov %s912_s14 }
 0x116   :  { %24 = sbr.rel (!%p22_p11) target bundleno = 12 (0xc), region = 99 }
 0x11d   :  { %381 = vsyncpa [#allocation4], 1 }
 0x11e   :  { %383 = vsyncpa [#allocation4 + $0x1], 1 }
 0x11f   :  { %384 = vsyncpa [#allocation9], 1 }
 0x120   :  { %386 = vsyncpa [#allocation9 + $0x1], 1 }
 0x121   :  { %387 = vsyncpa [#allocation5], 1 }
 0x122   :  { %389 = vsyncpa [#allocation5 + $0x1], 1 }
 0x123   :  { %390 = vsyncpa [#allocation6], 1 }
 0x124   :  { %392 = vsyncpa [#allocation6 + $0x1], 1 }

</bundles_post_ra>
